<compile_context>
chip_gen: v6e
topology: v6e:2x2x1
jax: 0.10.0
libtpu: 0.0.40
codegen_flags: <defaults>
</compile_context>

<pallas_src>
import jax
import jax.numpy as jnp
from jax.experimental import pallas as pl
from jax.experimental.pallas import tpu as pltpu


def _round_up(x, m):
    return ((x + m - 1) // m) * m


# ----------------------------- Pallas kernel --------------------------------

def _seq2seq_kernel(dec_ref, ctx_ref, w_ref, b_ref, out_ref):
    # dec_ref: (tm, D)  f32   flattened decoder embeddings (batch folded into M)
    # ctx_ref: (tm, D)  f32   pooled encoder context, one row per output row
    # w_ref  : (D, tn)  bf16  output-projection tile (lane-dense padded V)
    # b_ref  : (1, tn)  f32   output bias tile
    # out_ref: (tm, tn) f32   logits tile
    hidden = dec_ref[...] + ctx_ref[...]              # f32 VPU add (free under MXU)
    out_ref[...] = jnp.dot(hidden.astype(jnp.bfloat16), w_ref[...],
                           preferred_element_type=jnp.float32) + b_ref[...]


def seq2seq_forward_pallas(enc_emb, enc_mask, dec_emb, w_out, b_out):
    """enc_emb (B,S_in,D) f32, enc_mask (B,S_in,1) f32, dec_emb (B,S_out,D) f32,
    w_out (D,V) f32, b_out (1,V) f32 -> logits (B, S_out, V) f32."""
    B, S_in, D = enc_emb.shape
    _, S_out, _ = dec_emb.shape
    V = w_out.shape[1]

    # Masked mean-pool context computed outside the kernel (only B*D floats;
    # XLA fuses it with the embedding gather). Keeps the kernel MXU-clean.
    cnt = jnp.maximum(jnp.sum(enc_mask, axis=1), 1.0)          # (B, 1)
    ctx = jnp.sum(enc_emb * enc_mask, axis=1) / cnt            # (B, D) f32

    # Fold batch into the matmul M dimension.
    M = B * S_out
    dec_flat = dec_emb.reshape(M, D)
    ctx_rows = jnp.repeat(ctx, S_out, axis=0)                  # (M, D)

    # MXU/lane-friendly tiling: rows at up to 256, vocab padded to >=128 lanes.
    tm = 256 if M >= 256 else _round_up(M, 8)
    M_pad = _round_up(M, tm)
    V_pad = _round_up(V, 128)
    tn = 256 if V_pad % 256 == 0 else 128

    if M_pad != M:
        dec_flat = jnp.pad(dec_flat, ((0, M_pad - M), (0, 0)))
        ctx_rows = jnp.pad(ctx_rows, ((0, M_pad - M), (0, 0)))
    w_pad = jnp.pad(w_out, ((0, 0), (0, V_pad - V))).astype(jnp.bfloat16)
    b_pad = jnp.pad(b_out, ((0, 0), (0, V_pad - V)))           # f32

    grid = (M_pad // tm, V_pad // tn)
    out = pl.pallas_call(
        _seq2seq_kernel,
        out_shape=jax.ShapeDtypeStruct((M_pad, V_pad), jnp.float32),
        grid=grid,
        in_specs=[
            pl.BlockSpec((tm, D), lambda i, j: (i, 0)),
            pl.BlockSpec((tm, D), lambda i, j: (i, 0)),
            pl.BlockSpec((D, tn), lambda i, j: (0, j)),
            pl.BlockSpec((1, tn), lambda i, j: (0, j)),
        ],
        out_specs=pl.BlockSpec((tm, tn), lambda i, j: (i, j)),
        compiler_params=pltpu.CompilerParams(
            dimension_semantics=("parallel", "parallel")),
    )(dec_flat, ctx_rows, w_pad, b_pad)

    return out[:M, :V].reshape(B, S_out, V)


# ----------------------------- Model wrapper ---------------------------------

class Seq2SeqModelConfig:
    def __init__(self, pad_index, sos_index, eos_index,
                 input_vocab_size, output_vocab_size):
        self.pad_index = pad_index
        self.sos_index = sos_index
        self.eos_index = eos_index
        self.input_vocab_size = input_vocab_size
        self.output_vocab_size = output_vocab_size


class Seq2SeqModelJAX:
    """Minimal concrete realization of the abstract Seq2SeqModel forward."""

    def __init__(self, config: Seq2SeqModelConfig, hidden_dim: int = 32):
        self.config = config
        self.pad_index = config.pad_index
        self.sos_index = config.sos_index
        self.eos_index = config.eos_index
        self.input_vocab_size = config.input_vocab_size
        self.output_vocab_size = config.output_vocab_size
        self.hidden_dim = hidden_dim
        self.reset_model()

    def reset_model(self):
        k = jax.random.PRNGKey(42)
        k1, k2, k3 = jax.random.split(k, 3)
        D = self.hidden_dim
        self.emb_in = (jax.random.normal(
            k1, (self.input_vocab_size, D), jnp.float32) * 0.02)
        self.emb_out = (jax.random.normal(
            k2, (self.output_vocab_size, D), jnp.float32) * 0.02)
        self.w_proj = (jax.random.normal(
            k3, (D, self.output_vocab_size), jnp.float32) * 0.02)
        self.b_proj = jnp.zeros((1, self.output_vocab_size), jnp.float32)
        return self

    def forward(self, input_tokens, target_tokens):
        # input_tokens : (B, S_in)  int32
        # target_tokens: (B, S_out) int32
        # returns logits (B, S_out, output_vocab_size) float32
        enc_emb = jnp.take(self.emb_in, input_tokens, axis=0)     # (B,S_in,D)
        dec_emb = jnp.take(self.emb_out, target_tokens, axis=0)   # (B,S_out,D)
        enc_mask = (input_tokens != self.pad_index).astype(
            jnp.float32)[..., None]                               # (B,S_in,1)
        return seq2seq_forward_pallas(
            enc_emb, enc_mask, dec_emb, self.w_proj, self.b_proj)


# --------------------------------- main ---------------------------------------

if __name__ == "__main__":
    cfg = Seq2SeqModelConfig(pad_index=0, sos_index=1, eos_index=2,
                             input_vocab_size=32, output_vocab_size=32)
    model = Seq2SeqModelJAX(cfg, hidden_dim=32)

    B, S_in, S_out = 2, 8, 8
    key = jax.random.PRNGKey(0)
    ki, kt = jax.random.split(key)
    input_tokens = jax.random.randint(
        ki, (B, S_in), 3, cfg.input_vocab_size, dtype=jnp.int32)
    # add some pad tokens at the tail of sequence 1
    input_tokens = input_tokens.at[1, -3:].set(cfg.pad_index)
    target_tokens = jax.random.randint(
        kt, (B, S_out), 3, cfg.output_vocab_size, dtype=jnp.int32)
    target_tokens = target_tokens.at[:, 0].set(cfg.sos_index)

    logits = model.forward(input_tokens, target_tokens)
    jax.block_until_ready(logits)
    assert logits.shape == (B, S_out, cfg.output_vocab_size)

    # ---------------- reference checks in plain JAX ----------------
    enc_emb = jnp.take(model.emb_in, input_tokens, axis=0)
    dec_emb = jnp.take(model.emb_out, target_tokens, axis=0)
    mask = (input_tokens != cfg.pad_index).astype(jnp.float32)[..., None]
    ctx = (enc_emb * mask).sum(axis=1, keepdims=True) / jnp.maximum(
        mask.sum(axis=1, keepdims=True), 1.0)
    hidden = dec_emb + ctx                                        # (B,S_out,D)

    # reference matching the kernel's bf16-MXU / f32-accum compute
    ref_bf16 = (jnp.dot(hidden.reshape(B * S_out, -1).astype(jnp.bfloat16),
                        model.w_proj.astype(jnp.bfloat16),
                        preferred_element_type=jnp.float32)
                + model.b_proj).reshape(B, S_out, cfg.output_vocab_size)
    assert jnp.allclose(logits, ref_bf16, atol=1e-4, rtol=1e-4)

    # loose sanity check against the full-f32 math
    ref_f32 = hidden @ model.w_proj + model.b_proj
    assert jnp.allclose(logits, ref_f32, atol=1e-2, rtol=1e-2)

    print("KERNEL_OK")
</pallas_src>

<mosaic_0001>
module attributes {stable_mosaic.version = 11 : i64} {
  func.func @_seq2seq_kernel(%arg0: i32, %arg1: i32, %arg2: memref<16x32xf32, #tpu.memory_space<vmem>>, %arg3: memref<16x32xf32, #tpu.memory_space<vmem>>, %arg4: memref<32x128xbf16, #tpu.memory_space<vmem>>, %arg5: memref<1x128xf32, #tpu.memory_space<vmem>>, %arg6: memref<16x128xf32, #tpu.memory_space<vmem>>) attributes {dimension_semantics = [#tpu.dimension_semantics<parallel>, #tpu.dimension_semantics<parallel>], iteration_bounds = array<i64: 1, 1>, scalar_prefetch = 0 : i64, scratch_operands = 0 : i64, tpu.core_type = #tpu.core_type<tc>, window_params = [{transform_indices = @transform_0, window_bounds = array<i64: 16, 32>}, {transform_indices = @transform_1, window_bounds = array<i64: 16, 32>}, {transform_indices = @transform_2, window_bounds = array<i64: 32, 128>}, {transform_indices = @transform_3, window_bounds = array<i64: 1, 128>}, {transform_indices = @transform_4, window_bounds = array<i64: 16, 128>}]} {
    %c0 = arith.constant 0 : index
    %c0_0 = arith.constant 0 : index
    %0 = vector.load %arg2[%c0, %c0_0] : memref<16x32xf32, #tpu.memory_space<vmem>>, vector<16x32xf32>
    %c0_1 = arith.constant 0 : index
    %c0_2 = arith.constant 0 : index
    %1 = vector.load %arg3[%c0_1, %c0_2] : memref<16x32xf32, #tpu.memory_space<vmem>>, vector<16x32xf32>
    %2 = arith.addf %0, %1 : vector<16x32xf32>
    %3 = arith.truncf %2 : vector<16x32xf32> to vector<16x32xbf16>
    %c0_3 = arith.constant 0 : index
    %c0_4 = arith.constant 0 : index
    %4 = vector.load %arg4[%c0_3, %c0_4] : memref<32x128xbf16, #tpu.memory_space<vmem>>, vector<32x128xbf16>
    %cst = arith.constant dense<0.000000e+00> : vector<16x128xf32>
    %5 = tpu.matmul %3, %4, %cst {dimension_numbers = #tpu.dot_dimension_numbers<[1], [0], [0], [1], [0, 0, 1, 1], [], []>} : vector<16x32xbf16>, vector<32x128xbf16>, vector<16x128xf32> -> vector<16x128xf32>
    %c0_5 = arith.constant 0 : index
    %c0_6 = arith.constant 0 : index
    %6 = vector.load %arg5[%c0_5, %c0_6] : memref<1x128xf32, #tpu.memory_space<vmem>>, vector<1x128xf32>
    %7 = vector.broadcast %6 : vector<1x128xf32> to vector<16x128xf32>
    %8 = arith.addf %5, %7 : vector<16x128xf32>
    %c0_7 = arith.constant 0 : index
    %c0_8 = arith.constant 0 : index
    %9 = vector.load %arg6[%c0_7, %c0_8] : memref<16x128xf32, #tpu.memory_space<vmem>>, vector<16x128xf32>
    tpu.vector_store %arg6[%c0_7, %c0_8], %8 {strides = array<i32>} : memref<16x128xf32, #tpu.memory_space<vmem>>, vector<16x128xf32>,
    return
  }
  func.func @transform_0(%arg0: i32, %arg1: i32) -> (i32, i32) {
    %c0_i32 = arith.constant 0 : i32
    %c0_i32_0 = arith.constant 0 : i32
    return %arg0, %c0_i32 : i32, i32
  }
  func.func @transform_1(%arg0: i32, %arg1: i32) -> (i32, i32) {
    %c0_i32 = arith.constant 0 : i32
    %c0_i32_0 = arith.constant 0 : i32
    return %arg0, %c0_i32 : i32, i32
  }
  func.func @transform_2(%arg0: i32, %arg1: i32) -> (i32, i32) {
    %c0_i32 = arith.constant 0 : i32
    %c0_i32_0 = arith.constant 0 : i32
    return %c0_i32, %arg1 : i32, i32
  }
  func.func @transform_3(%arg0: i32, %arg1: i32) -> (i32, i32) {
    %c0_i32 = arith.constant 0 : i32
    %c0_i32_0 = arith.constant 0 : i32
    return %c0_i32, %arg1 : i32, i32
  }
  func.func @transform_4(%arg0: i32, %arg1: i32) -> (i32, i32) {
    %c0_i32 = arith.constant 0 : i32
    return %arg0, %arg1 : i32, i32
  }
}

</mosaic_0001>

<bundles_post_ra>
// kernel: tpu_custom_call.1
= control target key start
LH: loop header
LB: loop body
LE: loop exit
PB: predicated region body
PF: predicated region fallthrough
CT: control target
= control target key end

     0   :  { %9 = vsyncpa [#allocation3], 0  ;;  %s327_s0 = inlined_call_operand.hbm [shape: f32[16,32], index: 0, kind: input, shape index: {}]   ;;  %s328_s1 = inlined_call_operand.hbm [shape: f32[16,32], index: 1, kind: input, shape index: {}]   ;;  %s329_s2 = inlined_call_operand.hbm [shape: bf16[32,128], index: 2, kind: input, shape index: {}]   ;;  %s330_s3 = inlined_call_operand.vmem [shape: f32[1,128], index: 3, kind: input, shape index: {}]   ;;  %s331_s4 = inlined_call_operand.hbm [shape: f32[16,128], index: 4, kind: output, shape index: {}]  }
   0x1   :  { %10 = vsyncpa [#allocation6], 0 }
   0x2   :  { %11 = vsyncpa [#allocation4], 0  ;;  %s268_s15 = smov [#allocation5]   ;;  %s269_s17 = smov [#allocation2]  }
   0x3   :  { %s29_s16 = sshll.u32 %s268_s15, 4  ;;  %s17_s18 = sshll.u32 %s269_s17, 4  ;;  %s30_s16 = int_to_ptr.vmem [resolvable:$true] %s29_s16  ;;  %s18_s18 = int_to_ptr.vmem [resolvable:$true] %s17_s18 }
   0x4   :  { %s190_s19 = scalar_lea.vmem %s30_s16, 256  ;;  %p195_p1 = scmp.lt.s32.totalorder %s30_s16, %s30_s16 }
   0x5   :  { %p191_p0 = scmp.ne.s32.totalorder %s30_s16, %s190_s19  ;;  %p196_p2 = scmp.lt.s32.totalorder %s190_s19, %s190_s19 }
   0x7   :  { %p197_p3 = por %p196_p2, %p195_p1 }
   0x9   :  { %p198_p4 = pnand %p197_p3, %p191_p0 }
   0xb   :  { %201 = shalt.err (!%p198_p4)
}
   0xc   :  { %s270_s20 = smov 128   ;;  %s271_s21 = smov 8  }
   0xd   :  { %35 = dma.hbm_to_vmem [thread:$0]  %s328_s1, 256, %s30_s16, [#allocation6], %s270_s20, %s270_s20, %s271_s21  }
   0xe   :  { %s210_s24 = scalar_lea.vmem %s18_s18, 256  ;;  %p215_p6 = scmp.lt.s32.totalorder %s18_s18, %s18_s18 }
   0xf   :  { %p211_p5 = scmp.ne.s32.totalorder %s18_s18, %s210_s24  ;;  %p216_p7 = scmp.lt.s32.totalorder %s210_s24, %s210_s24 }
  0x11   :  { %p217_p8 = por %p216_p7, %p215_p6 }
  0x13   :  { %p218_p9 = pnand %p217_p8, %p211_p5 }
  0x15   :  { %221 = shalt.err (!%p218_p9)
}
  0x16   :  { %23 = dma.hbm_to_vmem [thread:$0]  %s327_s0, 256, %s18_s18, [#allocation3], %s270_s20, %s270_s20, %s271_s21  }
  0x17   :  { %s272_s27 = smov [#allocation7]  }
  0x18   :  { %s41_s28 = sshll.u32 %s272_s27, 4  ;;  %s42_s28 = int_to_ptr.vmem [resolvable:$true] %s41_s28 }
  0x19   :  { %s230_s29 = scalar_lea.vmem %s42_s28, 256  ;;  %p235_p11 = scmp.lt.s32.totalorder %s42_s28, %s42_s28 }
  0x1a   :  { %p231_p10 = scmp.ne.s32.totalorder %s42_s28, %s230_s29  ;;  %p236_p12 = scmp.lt.s32.totalorder %s230_s29, %s230_s29 }
  0x1c   :  { %p237_p13 = por %p236_p12, %p235_p11 }
  0x1e   :  { %p238_p0 = pnand %p237_p13, %p231_p10 }
  0x20   :  { %241 = shalt.err (!%p238_p0)
}
  0x21   :  { %s273_s1 = smov 64   ;;  %s274_s30 = smov 4  }
  0x22   :  { %47 = dma.hbm_to_vmem [thread:$0]  %s329_s2, 256, %s42_s28, [#allocation6], %s273_s1, %s273_s1, %s274_s30  }
  0x23   :  { %262 = dma.done.wait [#allocation3], 256  }
  0x24   :  { %263 = vsyncadd [#allocation3], 4294967040 }
  0x25   :  { %264 = dma.done.wait [#allocation6], 512  }
  0x26   :  { %265 = vsyncadd [#allocation6], 4294966784  ;;  %v275_v0 = vmov 0.0   ;;  %vm276_vm0 = vmmov 0   ;;  %v180_v1 = vld [vmem:[#allocation7 + $0x8] sm:$0xff]   ;;  %v181_v2 = vld [vmem:[#allocation7] sm:$0xff]  }
  0x27   :  { %162 = vmatprep.subr.bf16.mxu0 %v275_v0  ;;  %166 = vmatprep.mubr.msk.bf16.mxu0 %vm276_vm0, %v275_v0  ;;  %v60_v3 = vld [vmem:[#allocation2] sm:$0xff]  ;;  %v61_v4 = vld [vmem:[#allocation2 + $0x8] sm:$0xff]  ;;  %v62_v5 = vld [vmem:[#allocation5] sm:$0xff]  ;;  %vm90_vm1 = vcmask 261120   ;;  %s277_s7 = smov [#allocation8]  }
  0x28   :  { %163 = vmatpush3.bf16.msra.mxu0 %v180_v1  ;;  %v63_v6 = vld [vmem:[#allocation5 + $0x8] sm:$0xff]  ;;  %v64_v7 = vadd.f32 %v62_v5, %v60_v3  ;;  %v155_v10 = vld [vmem:[%s330_s3] ss:$0 sm:$0xff]  ;;  %s142_s8 = sshll.u32 %s277_s7, 4  ;;  %s143_s8 = int_to_ptr.vmem [resolvable:$true] %s142_s8 }
  0x29   :  { %164 = vmatprep.subr.bf16.mxu0 %v275_v0  ;;  %v65_v8 = vadd.f32 %v63_v6, %v61_v4  ;;  %s242_s9 = scalar_lea.vmem %s143_s8, 256  ;;  %p247_p2 = scmp.lt.s32.totalorder %s143_s8, %s143_s8 }
  0x2a   :  { %p243_p1 = scmp.ne.s32.totalorder %s143_s8, %s242_s9  ;;  %p248_p3 = scmp.lt.s32.totalorder %s242_s9, %s242_s9 }
  0x2b   :  { %v66_v9 = vpack.c.bf16 %v65_v8, %v64_v7 }
  0x2c   :  { %165 = vmatpush3.bf16.msra.mxu0 %v181_v2  ;;  %p249_p4 = por %p248_p3, %p247_p2 }
  0x2e   :  { %p250_p5 = pnand %p249_p4, %p243_p1 }
  0x2f   :  { %167 = vmatmul.mubr.msk.bf16.vlgmr.msra.gmra.mxu0 %vm90_vm1, %v66_v9 }
  0xef   :  { %v128_v11 = vpop.f32.mrf.mxu0 }
  0xf0   :  { %v129_v12 = vadd.f32 %v155_v10, %v128_v11 }
  0xf1   :  { %v168_v13 = vpop.f32.mrf.mxu0 }
  0xf2   :  { %135 = vst [vmem:[#allocation8] sm:$0xff] %v129_v12 }
  0xf3   :  { %v131_v14 = vpop.f32.mrf.mxu0 }
  0xf4   :  { %v132_v15 = vadd.f32 %v155_v10, %v131_v14 }
  0xf5   :  { %v169_v16 = vpop.f32.mrf.mxu0 }
  0xf6   :  { %136 = vst [vmem:[#allocation8 + $0x8] sm:$0xff] %v132_v15 }
  0xf7   :  { %253 = shalt.err (!%p250_p5)
}
  0xf8   :  { %148 = dma.vmem_to_hbm [thread:$0]  %s143_s8, 256, %s331_s4, [#allocation4], %s270_s20, %s270_s20, %s271_s21  }
  0xf9   :  { %266 = dma.done.wait [#allocation4], 256  }
  0xfa   :  { %267 = vsyncadd [#allocation4], 4294967040 }
  0xfb   :  { %152 = vsyncpa [#allocation3], 1 }
  0xfc   :  { %153 = vsyncpa [#allocation6], 1 }
  0xfd   :  { %154 = vsyncpa [#allocation4], 1 }

</bundles_post_ra>
